<compile_context>
chip_gen: v7x
topology: tpu7x:2x2x1
jax: 0.10.0
libtpu: 0.0.40
codegen_flags: <defaults>
</compile_context>

<pallas_src>
import functools

import jax
import jax.numpy as jnp
from jax.experimental import pallas as pl
from jax.experimental.pallas import tpu as pltpu


def _round_up(x: int, m: int) -> int:
    return (x + m - 1) // m * m


def _cdiv(a: int, b: int) -> int:
    return (a + b - 1) // b


def _decoding_bce_partial_kernel(x_ref, p_ref, m_ref, o_ref, *,
                                 tile_s: int, chunk: int,
                                 valid_last: int, num_s: int):
    """One sample-tile of stable BCE-with-logits, reduced to an (8,128) partial.

    x_ref: logits tile          [B, Nb, tile_s]   (native dtype)
    p_ref: presence tile        [B, 1,  tile_s]
    m_ref: message bits         [B, Nb, 1]        (resident, fetched once)
    o_ref: per-step partial sum [8, 128]          f32 (row 0 holds the sum)
    """
    nb = x_ref.shape[1]
    m = m_ref[...].astype(jnp.float32)                           # (B, NB, 1)

    small = tile_s < 128                        # whole sample dim fits below one lane-tile
    acc_w = tile_s if small else 128

    def block_sum(valid: int):
        """Loss sum over the first `valid` samples of this tile -> (1, acc_w)."""
        acc = jnp.zeros((nb, acc_w), jnp.float32)
        for start in range(0, tile_s, chunk):
            if start >= valid:                  # fully-padded chunks: statically skipped
                break
            w = min(chunk, tile_s - start)
            xc = x_ref[:, :, start:start + w].astype(jnp.float32)   # (B, NB, w)
            pc = p_ref[:, :, start:start + w].astype(jnp.float32)   # (B, 1,  w)
            y = m * pc                                               # target, built in vregs
            # numerically stable BCE with logits
            l = jnp.maximum(xc, 0.0) - xc * y + jnp.log1p(jnp.exp(-jnp.abs(xc)))
            if start + w > valid:               # single straddling chunk of the ragged tile
                lane = jax.lax.broadcasted_iota(jnp.int32, (1, 1, w), 2)
                l = jnp.where(lane < (valid - start), l, 0.0)
            l2 = jnp.sum(l, axis=0)                                  # (NB, w), VPU adds
            if small:
                acc = acc + l2
            else:
                for k in range(w // 128):       # fold 128-lane groups into the accumulator
                    acc = acc + l2[:, k * 128:(k + 1) * 128]
        return jnp.sum(acc, axis=0, keepdims=True)                   # (1, acc_w)

    def write(row):
        o_ref[...] = jnp.zeros_like(o_ref)
        o_ref[0:1, 0:row.shape[1]] = row

    if num_s == 1:
        write(block_sum(valid_last))
    elif valid_last == tile_s:
        # S divides evenly into tiles: no masking anywhere.
        write(block_sum(tile_s))
    else:
        is_last = pl.program_id(0) == num_s - 1

        @pl.when(jnp.logical_not(is_last))
        def _():
            write(block_sum(tile_s))

        @pl.when(is_last)
        def _():
            write(block_sum(valid_last))


def decoding_loss(detector_outputs: jax.Array,
                  ground_truth_presence: jax.Array,
                  ground_truth_message: jax.Array) -> jax.Array:
    """BCEWithLogitsLoss(mean) of detector_outputs vs (message ⊗ presence)."""
    if detector_outputs.ndim != 3:
        raise ValueError(f"detector_outputs must be 3D, got {detector_outputs.ndim}D")
    if ground_truth_presence.ndim != 3:
        raise ValueError(
            f"ground_truth_presence must be 3D, got {ground_truth_presence.ndim}D")
    if ground_truth_message.ndim != 2:
        raise ValueError(
            f"ground_truth_message must be 2D, got {ground_truth_message.ndim}D")

    B, NB, S = detector_outputs.shape
    if ground_truth_presence.shape[0] != B:
        raise ValueError("Batch size mismatch between detector outputs and presence mask")
    if ground_truth_message.shape[0] != B:
        raise ValueError("Batch size mismatch between detector outputs and message")
    if ground_truth_presence.shape[1] != 1 or ground_truth_presence.shape[2] != S:
        raise ValueError("ground_truth_presence must have shape [batch, 1, samples]")
    if ground_truth_message.shape[1] != NB:
        raise ValueError("Message bit-count mismatch with detector outputs")

    x = detector_outputs                           # (B, NB, S), native dtype
    pres = ground_truth_presence                   # (B, 1, S), native dtype
    msg = ground_truth_message.reshape(B, NB, 1)   # free reshape, tiny, resident in VMEM

    x_item = x.dtype.itemsize
    p_item = pres.dtype.itemsize
    col_bytes = B * NB * x_item + B * p_item       # HBM bytes per sample column

    if S < 128:
        tile_s, chunk, num_s, valid_last = S, S, 1, S
    else:
        s_floor = (S // 128) * 128
        # ~4 MiB of (logits + presence) per grid step: double-buffered ~8 MiB,
        # inside v5e's 16 MiB scoped-VMEM default and well past the 0.35 us
        # per-step-overhead knee on all generations.
        target_bytes = 4 * 1024 * 1024
        tile_s = max(128, (target_bytes // col_bytes) // 128 * 128)
        tile_s = min(tile_s, s_floor)
        # Keep >= 2 grid steps when there is enough work so both v7x TensorCores are fed.
        if _cdiv(S, tile_s) < 2 and S >= 4096:
            tile_s = min(s_floor, _round_up(_cdiv(S, 2), 128))
        num_s = _cdiv(S, tile_s)
        valid_last = S - (num_s - 1) * tile_s
        # In-kernel chunk width: ~16 f32 vregs per loaded sub-tile, bounded unroll count.
        row_tiles = B * _cdiv(NB, 8)
        chunk = 128 * max(1, 16 // row_tiles)
        chunk = max(chunk, _round_up(_cdiv(tile_s, 48), 128))
        chunk = min(chunk, tile_s)

    n_elems = B * NB * S
    cost = pl.CostEstimate(
        flops=7 * n_elems,
        transcendentals=2 * n_elems,
        bytes_accessed=int(x.size * x_item + pres.size * p_item
                           + msg.size * msg.dtype.itemsize
                           + num_s * 8 * 128 * 4))

    kernel = functools.partial(_decoding_bce_partial_kernel,
                               tile_s=tile_s, chunk=chunk,
                               valid_last=valid_last, num_s=num_s)

    partials = pl.pallas_call(
        kernel,
        out_shape=jax.ShapeDtypeStruct((num_s * 8, 128), jnp.float32),
        grid_spec=pltpu.PrefetchScalarGridSpec(
            num_scalar_prefetch=0,
            grid=(num_s,),
            in_specs=[
                pl.BlockSpec((B, NB, tile_s), lambda j: (0, 0, j)),
                pl.BlockSpec((B, 1, tile_s), lambda j: (0, 0, j)),
                pl.BlockSpec((B, NB, 1), lambda j: (0, 0, 0)),
            ],
            out_specs=pl.BlockSpec((8, 128), lambda j: (j, 0)),
        ),
        compiler_params=pltpu.CompilerParams(
            dimension_semantics=("parallel",)),
        cost_estimate=cost,
    )(x, pres, msg)

    # Tiny finalization in plain JAX; divide by the TRUE element count.
    return jnp.sum(partials, dtype=jnp.float32) / jnp.float32(B * NB * S)


def _reference(detector_outputs, ground_truth_presence, ground_truth_message):
    """Pure-JAX reference for the DecodingLoss forward pass."""
    xf = detector_outputs.astype(jnp.float32)
    y = (ground_truth_message[:, :, None].astype(jnp.float32)
         * ground_truth_presence.astype(jnp.float32))        # (B, NB, S)
    loss = jnp.maximum(xf, 0.0) - xf * y + jnp.log1p(jnp.exp(-jnp.abs(xf)))
    return jnp.mean(loss)


if __name__ == "__main__":
    key = jax.random.PRNGKey(0)
    k1, k2, k3, k4 = jax.random.split(key, 4)

    # Shapes implied by forward(): [batch, b, samples], [batch, 1, samples], [batch, b]
    B, NB, S = 2, 4, 1024
    detector_outputs = jax.random.normal(k1, (B, NB, S), dtype=jnp.float32)
    ground_truth_presence = (
        jax.random.uniform(k2, (B, 1, S)) > 0.5).astype(jnp.float32)
    ground_truth_message = (
        jax.random.uniform(k3, (B, NB)) > 0.5).astype(jnp.float32)

    loss = decoding_loss(detector_outputs, ground_truth_presence, ground_truth_message)
    loss = jax.block_until_ready(loss)
    ref = _reference(detector_outputs, ground_truth_presence, ground_truth_message)
    assert jnp.allclose(loss, ref, rtol=1e-5, atol=1e-6), (loss, ref)

    # Non-128-aligned sample count exercises the ragged last block + in-kernel mask
    # (no wrapper-side padding copy any more) and the true-count mean.
    S2 = 1000
    x2 = jax.random.normal(k4, (B, NB, S2), dtype=jnp.float32)
    p2 = ground_truth_presence[:, :, :S2]
    loss2 = jax.block_until_ready(
        decoding_loss(x2, p2, ground_truth_message))
    ref2 = _reference(x2, p2, ground_truth_message)
    assert jnp.allclose(loss2, ref2, rtol=1e-5, atol=1e-6), (loss2, ref2)

    print("KERNEL_OK")
</pallas_src>

<mosaic_0001>
module attributes {stable_mosaic.version = 11 : i64} {
  func.func @_decoding_bce_partial_kernel(%arg0: i32, %arg1: memref<2x4x1024xf32, #tpu.memory_space<vmem>>, %arg2: memref<2x1x1024xf32, #tpu.memory_space<vmem>>, %arg3: memref<2x4x1xf32, #tpu.memory_space<vmem>>, %arg4: memref<8x128xf32, #tpu.memory_space<vmem>>) attributes {dimension_semantics = [#tpu.dimension_semantics<parallel>], iteration_bounds = array<i64: 1>, scalar_prefetch = 0 : i64, scratch_operands = 0 : i64, tpu.core_type = #tpu.core_type<tc>, window_params = [{transform_indices = @transform_0, window_bounds = array<i64: 2, 4, 1024>}, {transform_indices = @transform_1, window_bounds = array<i64: 2, 1, 1024>}, {pipeline_mode = #tpu.pipeline_mode<synchronous>, transform_indices = @transform_2, window_bounds = array<i64: 2, 4, 1>}, {transform_indices = @transform_3, window_bounds = array<i64: 8, 128>}]} {
    %c0 = arith.constant 0 : index
    %c0_0 = arith.constant 0 : index
    %c0_1 = arith.constant 0 : index
    %0 = vector.load %arg3[%c0, %c0_0, %c0_1] : memref<2x4x1xf32, #tpu.memory_space<vmem>>, vector<2x4x1xf32>
    %cst = arith.constant 0.000000e+00 : f32
    %1 = vector.broadcast %cst : f32 to vector<4x128xf32>
    %c0_2 = arith.constant 0 : index
    %c0_3 = arith.constant 0 : index
    %c0_4 = arith.constant 0 : index
    %2 = vector.load %arg1[%c0_2, %c0_3, %c0_4] : memref<2x4x1024xf32, #tpu.memory_space<vmem>>, vector<2x4x1024xf32>
    %c0_5 = arith.constant 0 : index
    %c0_6 = arith.constant 0 : index
    %c0_7 = arith.constant 0 : index
    %3 = vector.load %arg2[%c0_5, %c0_6, %c0_7] : memref<2x1x1024xf32, #tpu.memory_space<vmem>>, vector<2x1x1024xf32>
    %4 = vector.broadcast %0 : vector<2x4x1xf32> to vector<2x4x1024xf32>
    %5 = vector.broadcast %3 : vector<2x1x1024xf32> to vector<2x4x1024xf32>
    %6 = arith.mulf %4, %5 : vector<2x4x1024xf32>
    %cst_8 = arith.constant 0.000000e+00 : f32
    %7 = vector.broadcast %cst_8 : f32 to vector<2x4x1024xf32>
    %8 = arith.maximumf %2, %7 : vector<2x4x1024xf32>
    %9 = arith.mulf %2, %6 : vector<2x4x1024xf32>
    %10 = arith.subf %8, %9 : vector<2x4x1024xf32>
    %11 = math.absf %2 : vector<2x4x1024xf32>
    %cst_9 = arith.constant 0.000000e+00 : f32
    %12 = vector.broadcast %cst_9 : f32 to vector<2x4x1024xf32>
    %13 = arith.subf %12, %11 : vector<2x4x1024xf32>
    %14 = math.exp %13 : vector<2x4x1024xf32>
    %15 = math.log1p %14 : vector<2x4x1024xf32>
    %16 = arith.addf %10, %15 : vector<2x4x1024xf32>
    %cst_10 = arith.constant dense<0.000000e+00> : vector<4x1024xf32>
    %17 = vector.multi_reduction <add>, %16, %cst_10 [0] : vector<2x4x1024xf32> to vector<4x1024xf32>
    %18 = vector.extract_strided_slice %17 {offsets = [0, 0], sizes = [4, 128], strides = [1, 1]} : vector<4x1024xf32> to vector<4x128xf32>
    %19 = arith.addf %1, %18 : vector<4x128xf32>
    %20 = vector.extract_strided_slice %17 {offsets = [0, 128], sizes = [4, 128], strides = [1, 1]} : vector<4x1024xf32> to vector<4x128xf32>
    %21 = arith.addf %19, %20 : vector<4x128xf32>
    %22 = vector.extract_strided_slice %17 {offsets = [0, 256], sizes = [4, 128], strides = [1, 1]} : vector<4x1024xf32> to vector<4x128xf32>
    %23 = arith.addf %21, %22 : vector<4x128xf32>
    %24 = vector.extract_strided_slice %17 {offsets = [0, 384], sizes = [4, 128], strides = [1, 1]} : vector<4x1024xf32> to vector<4x128xf32>
    %25 = arith.addf %23, %24 : vector<4x128xf32>
    %26 = vector.extract_strided_slice %17 {offsets = [0, 512], sizes = [4, 128], strides = [1, 1]} : vector<4x1024xf32> to vector<4x128xf32>
    %27 = arith.addf %25, %26 : vector<4x128xf32>
    %28 = vector.extract_strided_slice %17 {offsets = [0, 640], sizes = [4, 128], strides = [1, 1]} : vector<4x1024xf32> to vector<4x128xf32>
    %29 = arith.addf %27, %28 : vector<4x128xf32>
    %30 = vector.extract_strided_slice %17 {offsets = [0, 768], sizes = [4, 128], strides = [1, 1]} : vector<4x1024xf32> to vector<4x128xf32>
    %31 = arith.addf %29, %30 : vector<4x128xf32>
    %32 = vector.extract_strided_slice %17 {offsets = [0, 896], sizes = [4, 128], strides = [1, 1]} : vector<4x1024xf32> to vector<4x128xf32>
    %33 = arith.addf %31, %32 : vector<4x128xf32>
    %cst_11 = arith.constant dense<0.000000e+00> : vector<128xf32>
    %34 = vector.multi_reduction <add>, %33, %cst_11 [0] : vector<4x128xf32> to vector<128xf32>
    %35 = vector.shape_cast %34 : vector<128xf32> to vector<1x128xf32>
    %cst_12 = arith.constant 0.000000e+00 : f32
    %36 = vector.broadcast %cst_12 : f32 to vector<8x128xf32>
    %c0_13 = arith.constant 0 : index
    %c0_14 = arith.constant 0 : index
    %37 = vector.load %arg4[%c0_13, %c0_14] : memref<8x128xf32, #tpu.memory_space<vmem>>, vector<8x128xf32>
    tpu.vector_store %arg4[%c0_13, %c0_14], %36 {strides = array<i32>} : memref<8x128xf32, #tpu.memory_space<vmem>>, vector<8x128xf32>,
    %c0_15 = arith.constant 0 : index
    %c0_16 = arith.constant 0 : index
    %38 = vector.load %arg4[%c0_15, %c0_16] : memref<8x128xf32, #tpu.memory_space<vmem>>, vector<1x128xf32>
    tpu.vector_store %arg4[%c0_15, %c0_16], %35 {strides = array<i32>} : memref<8x128xf32, #tpu.memory_space<vmem>>, vector<1x128xf32>,
    return
  }
  func.func @transform_0(%arg0: i32) -> (i32, i32, i32) {
    %c0_i32 = arith.constant 0 : i32
    %c0_i32_0 = arith.constant 0 : i32
    %c0_i32_1 = arith.constant 0 : i32
    return %c0_i32, %c0_i32_0, %arg0 : i32, i32, i32
  }
  func.func @transform_1(%arg0: i32) -> (i32, i32, i32) {
    %c0_i32 = arith.constant 0 : i32
    %c0_i32_0 = arith.constant 0 : i32
    %c0_i32_1 = arith.constant 0 : i32
    return %c0_i32, %c0_i32_0, %arg0 : i32, i32, i32
  }
  func.func @transform_2(%arg0: i32) -> (i32, i32, i32) {
    %c0_i32 = arith.constant 0 : i32
    %c0_i32_0 = arith.constant 0 : i32
    %c0_i32_1 = arith.constant 0 : i32
    %c0_i32_2 = arith.constant 0 : i32
    return %c0_i32, %c0_i32_0, %c0_i32_1 : i32, i32, i32
  }
  func.func @transform_3(%arg0: i32) -> (i32, i32) {
    %c0_i32 = arith.constant 0 : i32
    %c0_i32_0 = arith.constant 0 : i32
    return %arg0, %c0_i32 : i32, i32
  }
}

</mosaic_0001>

<bundles_post_ra>
// kernel: tpu_custom_call.1
= control target key start
LH: loop header
LB: loop body
LE: loop exit
PB: predicated region body
PF: predicated region fallthrough
CT: control target
= control target key end

     0   :  { %8 = vsyncpa [#allocation3], 0  ;;  %s841_s0 = inlined_call_operand.hbm [shape: f32[2,4,1024], index: 0, kind: input, shape index: {}]   ;;  %s842_s1 = inlined_call_operand.hbm [shape: f32[2,1,1024], index: 1, kind: input, shape index: {}]   ;;  %s843_s2 = inlined_call_operand.vmem [shape: f32[2,4,1], index: 2, kind: input, shape index: {}]   ;;  %s844_s3 = inlined_call_operand.hbm [shape: f32[8,128], index: 3, kind: output, shape index: {}]  }
   0x1   :  { %9 = vsyncpa [#allocation6], 0 }
   0x2   :  { %10 = vsyncpa [#allocation4], 0  ;;  %s527_s12 = smov [#allocation2]   ;;  %s455_s16 = scalar_lea.hbm %s841_s0, 1024 }
   0x3   :  { %s16_s13 = sshll.u32 %s527_s12, 4  ;;  %p456_p0 = scmp.ne.s32.totalorder %s841_s0, %s455_s16  ;;  %s17_s13 = int_to_ptr.vmem [resolvable:$true] %s16_s13 }
   0x4   :  { %p459_p1 = scmp.lt.u32.totalorder %s455_s16, %s841_s0 }
   0x6   :  { %p461_p2 = pnand %p459_p1, %p456_p0 }
   0x8   :  { %464 = shalt.err (!%p461_p2)
}
   0x9   :  { %s465_s21 = scalar_lea.vmem %s17_s13, 1024  ;;  %p470_p4 = scmp.lt.s32.totalorder %s17_s13, %s17_s13 }
   0xa   :  { %p466_p3 = scmp.ne.s32.totalorder %s17_s13, %s465_s21  ;;  %p471_p5 = scmp.lt.s32.totalorder %s465_s21, %s465_s21 }
   0xc   :  { %p472_p6 = por %p471_p5, %p470_p4 }
   0xe   :  { %p473_p7 = pnand %p472_p6, %p466_p3 }
  0x10   :  { %476 = shalt.err (!%p473_p7)
}
  0x11   :  { %s528_s22 = smov 512   ;;  %s529_s23 = smov 32  }
  0x12   :  { %22 = dma.hbm_to_vmem [thread:$0]  %s841_s0, 1024, %s17_s13, [#allocation3], %s528_s22, %s528_s22, %s529_s23  }
  0x13   :  { %s530_s26 = smov [#allocation5]   ;;  %s477_s30 = scalar_lea.hbm %s842_s1, 256 }
  0x14   :  { %s28_s27 = sshll.u32 %s530_s26, 4  ;;  %p478_p8 = scmp.ne.s32.totalorder %s842_s1, %s477_s30  ;;  %s29_s27 = int_to_ptr.vmem [resolvable:$true] %s28_s27 }
  0x15   :  { %p481_p9 = scmp.lt.u32.totalorder %s477_s30, %s842_s1 }
  0x17   :  { %p483_p10 = pnand %p481_p9, %p478_p8 }
  0x19   :  { %486 = shalt.err (!%p483_p10)
}
  0x1a   :  { %s487_s8 = scalar_lea.vmem %s29_s27, 256  ;;  %p492_p12 = scmp.lt.s32.totalorder %s29_s27, %s29_s27 }
  0x1b   :  { %p488_p11 = scmp.ne.s32.totalorder %s29_s27, %s487_s8  ;;  %p493_p13 = scmp.lt.s32.totalorder %s487_s8, %s487_s8 }
  0x1d   :  { %p494_p0 = por %p493_p13, %p492_p12 }
  0x1f   :  { %p495_p1 = pnand %p494_p0, %p488_p11 }
  0x21   :  { %498 = shalt.err (!%p495_p1)
}
  0x22   :  { %s531_s0 = smov 128   ;;  %s532_s9 = smov 8  }
  0x23   :  { %34 = dma.hbm_to_vmem [thread:$0]  %s842_s1, 256, %s29_s27, [#allocation6], %s531_s0, %s531_s0, %s532_s9  }
  0x24   :  { %521 = dma.done.wait [#allocation3], 1024  }
  0x25   :  { %522 = vsyncadd [#allocation3], 4294966272 }
  0x26   :  { %523 = dma.done.wait [#allocation6], 256  }
  0x27   :  { %524 = vsyncadd [#allocation6], 4294967040  ;;  %v533_v0 = vmov 0   ;;  %v43_v1 = vld [vmem:[%s843_s2] sm:$0xf]  ;;  %v534_v3 = vmov 0.0   ;;  %v67_v29 = vlaneseq }
  0x28   :  { %422 = vset.pattern.permute.xlu0 %v533_v0  ;;  %v44_v2 = vld [vmem:[%s843_s2 + $0x4] sm:$0xf]  ;;  %395 = vst [vmem:[#allocation7] sm:$0xff] %v534_v3  ;;  %v588_v5 = vld [vmem:[#allocation2 + $0x8] sm:$0xff]  ;;  %v597_v13 = vld [vmem:[#allocation2 + $0x30] sm:$0xff]  ;;  %vm355_vm6 = vcmask 1043456  }
  0x29   :  { %57 = vperm.xlu0 %422, %v43_v1   ;;  %v586_v4 = vld [vmem:[#allocation2] sm:$0xff]  ;;  %v220_v7 = vand.u32 2147483647, %v588_v5  ;;  %v594_v10 = vld [vmem:[#allocation2 + $0x28] sm:$0xff]  ;;  %v599_v14 = vld [vmem:[#allocation2 + $0x10] sm:$0xff]  ;;  %v68_v35 = vshrl.u32 %v67_v29, 7 }
  0x2a   :  { %v219_v6 = vand.u32 2147483647, %v586_v4  ;;  %v592_v8 = vld [vmem:[#allocation2 + $0x20] sm:$0xff]  ;;  %v224_v15 = vand.u32 2147483647, %v594_v10  ;;  %v604_v21 = vld [vmem:[#allocation2 + $0x18] sm:$0xff] }
  0x2b   :  { %v223_v11 = vand.u32 2147483647, %v592_v8  ;;  %v228_v12 = vsub.f32 0.0, %v220_v7  ;;  %v225_v17 = vand.u32 2147483647, %v597_v13  ;;  %v606_v22 = vld [vmem:[#allocation2 + $0x38] sm:$0xff] }
  0x2c   :  { %v227_v9 = vsub.f32 0.0, %v219_v6  ;;  %v221_v20 = vand.u32 2147483647, %v599_v14  ;;  %v232_v23 = vsub.f32 0.0, %v224_v15  ;;  %v222_v27 = vand.u32 2147483647, %v604_v21 }
  0x2d   :  { %62 = vperm.xlu0 %422, %v44_v2   ;;  %v231_v18 = vsub.f32 0.0, %v223_v11  ;;  %v237_v19 = vmul.f32 1.442695, %v228_v12  ;;  %v233_v24 = vsub.f32 0.0, %v225_v17  ;;  %v226_v28 = vand.u32 2147483647, %v606_v22 }
  0x2e   :  { %v235_v16 = vmul.f32 1.442695, %v227_v9  ;;  %v229_v26 = vsub.f32 0.0, %v221_v20  ;;  %v245_v30 = vmul.f32 1.442695, %v232_v23  ;;  %v230_v33 = vsub.f32 0.0, %v222_v27 }
  0x2f   :  { %v243_v25 = vmul.f32 1.442695, %v231_v18  ;;  %v247_v31 = vmul.f32 1.442695, %v233_v24  ;;  %v234_v34 = vsub.f32 0.0, %v226_v28  ;;  %v69_v40 = vsub.s32 0, %v68_v35 }
  0x30   :  { %423 = vpow2.f32 %v235_v16  ;;  %v239_v32 = vmul.f32 1.442695, %v229_v26  ;;  %v241_v37 = vmul.f32 1.442695, %v230_v33  ;;  %v73_v41 = vsub.s32 1, %v68_v35  ;;  %v53_v43 = vld [vmem:[#allocation5] sm:$0xff] }
  0x31   :  { %425 = vpow2.f32 %v237_v19  ;;  %v249_v39 = vmul.f32 1.442695, %v234_v34  ;;  %v77_v42 = vsub.s32 2, %v68_v35  ;;  %v81_v44 = vsub.s32 3, %v68_v35  ;;  %v54_v55 = vld [vmem:[#allocation5 + $0x8] sm:$0xff]  ;;  %s535_s1 = smov [#allocation7]  }
  0x32   :  { %427 = vpow2.f32 %v243_v25  ;;  %v85_v45 = vsub.s32 4, %v68_v35  ;;  %v89_v46 = vsub.s32 5, %v68_v35  ;;  %v93_v48 = vsub.s32 6, %v68_v35  ;;  %s403_s2 = sshll.u32 %s535_s1, 4  ;;  %s404_s2 = int_to_ptr.vmem [resolvable:$true] %s403_s2 }
  0x33   :  { %429 = vpow2.f32 %v245_v30  ;;  %v97_v49 = vsub.s32 7, %v68_v35  ;;  %v163_v52 = vmax.f32 %v586_v4, 0.0  ;;  %v164_v53 = vmax.f32 %v588_v5, 0.0  ;;  %s499_s16 = scalar_lea.vmem %s404_s2, 128  ;;  %p504_p3 = scmp.lt.s32.totalorder %s404_s2, %s404_s2 }
  0x34   :  { %431 = vpow2.f32 %v247_v31  ;;  %v167_v54 = vmax.f32 %v592_v8, 0.0  ;;  %v621_v56 = vrot.slane %v53_v43, %v69_v40  ;;  %v168_v57 = vmax.f32 %v594_v10, 0.0  ;;  %p500_p2 = scmp.ne.s32.totalorder %s404_s2, %s499_s16  ;;  %p505_p4 = scmp.lt.s32.totalorder %s499_s16, %s499_s16 }
  0x35   :  { %433 = vpow2.f32 %v239_v32  ;;  %v169_v58 = vmax.f32 %v597_v13, 0.0  ;;  %v626_v60 = vrot.slane %v53_v43, %v73_v41  ;;  %v628_v61 = vrot.slane %v53_v43, %v77_v42 }
  0x36   :  { %435 = vpow2.f32 %v241_v37  ;;  %v630_v62 = vrot.slane %v53_v43, %v81_v44  ;;  %v634_v0 = vrot.slane %v53_v43, %v85_v45  ;;  %v636_v1 = vrot.slane %v53_v43, %v89_v46  ;;  %p506_p5 = por %p505_p4, %p504_p3 }
  0x37   :  { %437 = vpow2.f32 %v249_v39  ;;  %v639_v6 = vrot.slane %v53_v43, %v93_v48  ;;  %v641_v7 = vrot.slane %v53_v43, %v97_v49  ;;  %v643_v9 = vrot.slane %v54_v55, %v69_v40 }
  0x38   :  { %v645_v11 = vrot.slane %v54_v55, %v73_v41  ;;  %v649_v15 = vrot.slane %v54_v55, %v77_v42  ;;  %v651_v16 = vrot.slane %v54_v55, %v81_v44  ;;  %v653_v17 = vrot.slane %v54_v55, %v85_v45  ;;  %p507_p6 = pnand %p506_p5, %p500_p2 }
  0x39   :  { %v656_v19 = vrot.slane %v54_v55, %v89_v46  ;;  %v658_v20 = vrot.slane %v54_v55, %v93_v48  ;;  %v664_v28 = vrot.slane %v54_v55, %v97_v49  ;;  %v165_v35 = vmax.f32 %v599_v14, 0.0 }
  0x3a   :  { %v610_v36 = vpop.eup %423 }
  0x3b   :  { %v612_v38 = vpop.eup %425  ;;  %v251_v47 = vadd.f32 1.0, %v610_v36  ;;  %v254_v18 = vmul.f32 -0.5, %v610_v36  ;;  %v257_v34 = vand.u32 2147483647, %v610_v36 }
  0x3c   :  { %v260_v50 = vadd.f32 1.0, %v612_v38  ;;  %v616_v51 = vpop.eup %427  ;;  %v263_v23 = vmul.f32 -0.5, %v612_v38  ;;  %v266_v41 = vand.u32 2147483647, %v612_v38 }
  0x3d   :  { %439 = vlog2.f32 %v251_v47  ;;  %v632_v63 = vpop.eup %429  ;;  %v287_v2 = vadd.f32 1.0, %v616_v51  ;;  %v290_v25 = vmul.f32 -0.5, %v616_v51  ;;  %v255_v33 = vadd.f32 1.0, %v254_v18 }
  0x3e   :  { %441 = vlog2.f32 %v260_v50  ;;  %v432_v3 = vpop.eup %431  ;;  %v296_v24 = vadd.f32 1.0, %v632_v63  ;;  %v299_v26 = vmul.f32 -0.5, %v632_v63  ;;  %v264_v40 = vadd.f32 1.0, %v263_v23 }
  0x3f   :  { %v647_v12 = vpop.eup %433  ;;  %443 = vlog2.f32 %v287_v2  ;;  %v305_v27 = vadd.f32 1.0, %v432_v3  ;;  %v308_v29 = vmul.f32 -0.5, %v432_v3  ;;  %v293_v42 = vand.u32 2147483647, %v616_v51 }
  0x40   :  { %v269_v30 = vadd.f32 1.0, %v647_v12  ;;  %v272_v31 = vmul.f32 -0.5, %v647_v12  ;;  %v668_v32 = vpop.eup %435  ;;  %445 = vlog2.f32 %v296_v24  ;;  %v291_v43 = vadd.f32 1.0, %v290_v25 }
  0x41   :  { %v673_v39 = vpop.eup %437  ;;  %v300_v44 = vadd.f32 1.0, %v299_v26  ;;  %v302_v45 = vand.u32 2147483647, %v632_v63  ;;  %447 = vlog2.f32 %v305_v27  ;;  %v309_v47 = vadd.f32 1.0, %v308_v29 }
  0x42   :  { %449 = vlog2.f32 %v269_v30  ;;  %v273_v48 = vadd.f32 1.0, %v272_v31  ;;  %v278_v49 = vadd.f32 1.0, %v668_v32  ;;  %v311_v55 = vand.u32 2147483647, %v432_v3 }
  0x43   :  { %v281_v2 = vmul.f32 -0.5, %v668_v32  ;;  %v314_v18 = vadd.f32 1.0, %v673_v39  ;;  %v317_v23 = vmul.f32 -0.5, %v673_v39  ;;  %v683_v24 = vmul.f32 %v610_v36, %v255_v33 }
  0x44   :  { %vm685_vm0 = vcmp.lt.f32.partialorder %v257_v34, 0.0004427343  ;;  %vm689_vm1 = vcmp.lt.f32.partialorder %v266_v41, 0.0004427343  ;;  %v275_v27 = vand.u32 2147483647, %v647_v12  ;;  %v697_v30 = vmul.f32 %v612_v38, %v264_v40 }
  0x45   :  { %v700_v31 = vmul.f32 %v616_v51, %v291_v43  ;;  %v703_v36 = vmul.f32 %v632_v63, %v300_v44  ;;  %v707_v34 = vmul.f32 %v432_v3, %v309_v47  ;;  %v710_v41 = vmul.f32 %v647_v12, %v273_v48 }
  0x46   :  { %451 = vlog2.f32 %v278_v49  ;;  %vm712_vm2 = vcmp.lt.f32.partialorder %v293_v42, 0.0004427343  ;;  %vm716_vm3 = vcmp.lt.f32.partialorder %v302_v45, 0.0004427343  ;;  %vm720_vm4 = vcmp.lt.f32.partialorder %v311_v55, 0.0004427343 }
  0x47   :  { %v440_v46 = vpop.eup %439  ;;  %v724_v63 = vadd.f32 1.0, %v281_v2  ;;  %v284_v3 = vand.u32 2147483647, %v668_v32  ;;  %453 = vlog2.f32 %v314_v18  ;;  %v318_v12 = vadd.f32 1.0, %v317_v23 }
  0x48   :  { %v442_v50 = vpop.eup %441  ;;  %v694_v29 = vmul.f32 0.6931472, %v440_v46  ;;  %vm731_vm5 = vcmp.lt.f32.partialorder %v275_v27, 0.0004427343 }
  0x49   :  { %v705_v33 = vmul.f32 0.6931472, %v442_v50  ;;  %v444_v37 = vpop.eup %443  ;;  %vm801_vm8 = vcmp.lt.f32.partialorder %v284_v3, 0.0004427343 }
  0x4a   :  { %v259_v49 = vsel %vm685_vm0, %v683_v24, %v694_v29  ;;  %v289_v55 = vmul.f32 0.6931472, %v444_v37  ;;  %v749_v24 = vmul.f32 %v673_v39, %v318_v12 }
  0xa8   :  { %v58_v46 = vpop.permute.xlu0 %57 }
  0xa9   :  { %v147_v40 = vmul.f32 %v621_v56, %v58_v46  ;;  %v148_v42 = vmul.f32 %v626_v60, %v58_v46  ;;  %v149_v43 = vmul.f32 %v628_v61, %v58_v46  ;;  %v150_v44 = vmul.f32 %v630_v62, %v58_v46  ;;  %v446_v60 = vpop.eup %445 }
  0xaa   :  { %v151_v47 = vmul.f32 %v634_v0, %v58_v46  ;;  %v152_v48 = vmul.f32 %v636_v1, %v58_v46  ;;  %v320_v56 = vand.u32 2147483647, %v673_v39  ;;  %v268_v62 = vsel %vm689_vm1, %v697_v30, %v705_v33  ;;  %v448_v2 = vpop.eup %447 }
  0xab   :  { %v187_v50 = vcombine.low %v147_v40, %v148_v42  ;;  %v188_v61 = vcombine.low %v149_v43, %v150_v44  ;;  %v153_v0 = vmul.f32 %v639_v6, %v58_v46  ;;  %v154_v1 = vmul.f32 %v641_v7, %v58_v46  ;;  %v450_v25 = vpop.eup %449 }
  0xac   :  { %v189_v18 = vcombine.low %v151_v47, %v152_v48  ;;  %v63_v23 = vpop.permute.xlu0 %62  ;;  %v298_v37 = vmul.f32 0.6931472, %v446_v60  ;;  %vm758_vm7 = vcmp.lt.f32.partialorder %v320_v56, 0.0004427343  ;;  %v307_v46 = vmul.f32 0.6931472, %v448_v2 }
  0xad   :  { %v203_v27 = vmul.f32 %v187_v50, %v586_v4  ;;  %v204_v29 = vmul.f32 %v188_v61, %v588_v5  ;;  %v155_v40 = vmul.f32 %v643_v9, %v63_v23  ;;  %v156_v26 = vmul.f32 %v645_v11, %v63_v23 }
  0xae   :  { %v157_v6 = vmul.f32 %v649_v15, %v63_v23  ;;  %v158_v7 = vmul.f32 %v651_v16, %v63_v23  ;;  %v159_v30 = vmul.f32 %v653_v17, %v63_v23  ;;  %v160_v9 = vmul.f32 %v656_v19, %v63_v23  ;;  %v452_v16 = vpop.eup %451 }
  0xaf   :  { %v211_v33 = vsub.f32 %v163_v52, %v203_v27  ;;  %v161_v11 = vmul.f32 %v658_v20, %v63_v23  ;;  %v162_v12 = vmul.f32 %v664_v28, %v63_v23  ;;  %v191_v42 = vcombine.low %v155_v40, %v156_v26  ;;  %v454_v4 = vpop.eup %453 }
  0xb0   :  { %v192_v15 = vcombine.low %v157_v6, %v158_v7  ;;  %v271_v43 = vmul.f32 0.6931472, %v450_v25  ;;  %v190_v44 = vcombine.low %v153_v0, %v154_v1  ;;  %v205_v17 = vmul.f32 %v189_v18, %v599_v14 }
  0xb1   :  { %v212_v47 = vsub.f32 %v164_v53, %v204_v29  ;;  %v193_v48 = vcombine.low %v159_v30, %v160_v9  ;;  %v323_v52 = vadd.f32 %v259_v49, %v211_v33  ;;  %v194_v56 = vcombine.low %v161_v11, %v162_v12 }
  0xb2   :  { %v207_v19 = vmul.f32 %v191_v42, %v592_v8  ;;  %v208_v20 = vmul.f32 %v192_v15, %v594_v10  ;;  %v295_v28 = vsel %vm712_vm2, %v700_v31, %v289_v55  ;;  %v304_v60 = vsel %vm716_vm3, %v703_v36, %v298_v37 }
  0xb3   :  { %v313_v5 = vsel %vm720_vm4, %v707_v34, %v307_v46  ;;  %v209_v53 = vmul.f32 %v193_v48, %v597_v13  ;;  %v210_v49 = vmul.f32 %v194_v56, %v606_v22  ;;  %v277_v59 = vsel %vm731_vm5, %v710_v41, %v271_v43 }
  0xb4   :  { %v215_v50 = vsub.f32 %v167_v54, %v207_v19  ;;  %v216_v61 = vsub.f32 %v168_v57, %v208_v20  ;;  %v206_v36 = vmul.f32 %v190_v44, %v604_v21  ;;  %v213_v34 = vsub.f32 %v165_v35, %v205_v17 }
  0xb5   :  { %v217_v31 = vsub.f32 %v169_v58, %v209_v53  ;;  %v316_v38 = vmul.f32 0.6931472, %v454_v4  ;;  %v324_v51 = vadd.f32 %v268_v62, %v212_v47  ;;  %v339_v55 = vcombine.high %v323_v52, %v323_v52 }
  0xb6   :  { %v327_v8 = vadd.f32 %v295_v28, %v215_v50  ;;  %v328_v54 = vadd.f32 %v304_v60, %v216_v61  ;;  %v859_v10 = vmax.f32 %v606_v22, 0.0  ;;  %v280_v2 = vmul.f32 0.6931472, %v452_v16 }
  0xb7   :  { %v283_v41 = vmul.f32 %v668_v32, %v724_v63  ;;  %v329_v14 = vadd.f32 %v313_v5, %v217_v31  ;;  %v356_v62 = vsel %vm355_vm6, %v323_v52, 0.0  ;;  %v862_v22 = vmax.f32 %v604_v21, 0.0 }
  0xb8   :  { %v218_v57 = vsub.f32 %v859_v10, %v210_v49  ;;  %v343_v58 = vcombine.high %v327_v8, %v327_v8  ;;  %v344_v35 = vcombine.high %v328_v54, %v328_v54  ;;  %v357_v45 = vsel %vm355_vm6, %v327_v8, 0.0 }
  0xb9   :  { %v214_v0 = vsub.f32 %v862_v22, %v206_v36  ;;  %v322_v63 = vsel %vm758_vm7, %v749_v24, %v316_v38  ;;  %v325_v1 = vadd.f32 %v277_v59, %v213_v34  ;;  %v359_v32 = vsel %vm355_vm6, %v339_v55, 0.0 }
  0xba   :  { %v360_v3 = vsel %vm355_vm6, %v343_v58, 0.0  ;;  %v363_v18 = vsel %vm355_vm6, %v328_v54, 0.0  ;;  %v340_v23 = vcombine.high %v324_v51, %v324_v51  ;;  %v358_v25 = vadd.f32 %v357_v45, %v356_v62 }
  0xbb   :  { %v361_v27 = vadd.f32 %v360_v3, %v359_v32  ;;  %v286_v29 = vsel %vm801_vm8, %v283_v41, %v280_v2  ;;  %v362_v21 = vsel %vm355_vm6, %v324_v51, 0.0  ;;  %v330_v40 = vadd.f32 %v322_v63, %v218_v57 }
  0xbc   :  { %v345_v26 = vcombine.high %v329_v14, %v329_v14  ;;  %v366_v37 = vsel %vm355_vm6, %v344_v35, 0.0  ;;  %v364_v24 = vadd.f32 %v363_v18, %v362_v21  ;;  %v326_v7 = vadd.f32 %v286_v29, %v214_v0 }
  0xbd   :  { %v381_v6 = vadd.f32 %v361_v27, %v358_v25  ;;  %v341_v30 = vcombine.high %v325_v1, %v325_v1  ;;  %v365_v39 = vsel %vm355_vm6, %v340_v23, 0.0  ;;  %v369_v33 = vsel %vm355_vm6, %v329_v14, 0.0 }
  0xbe   :  { %v367_v46 = vadd.f32 %v366_v37, %v365_v39  ;;  %v346_v11 = vcombine.high %v330_v40, %v330_v40  ;;  %v368_v12 = vsel %vm355_vm6, %v325_v1, 0.0  ;;  %v372_v42 = vsel %vm355_vm6, %v345_v26, 0.0 }
  0xbf   :  { %v382_v9 = vadd.f32 %v381_v6, %v364_v24  ;;  %v370_v15 = vadd.f32 %v369_v33, %v368_v12  ;;  %v342_v16 = vcombine.high %v326_v7, %v326_v7  ;;  %v371_v44 = vsel %vm355_vm6, %v341_v30, 0.0 }
  0xc0   :  { %v375_v17 = vsel %vm355_vm6, %v330_v40, 0.0  ;;  %v373_v47 = vadd.f32 %v372_v42, %v371_v44  ;;  %v374_v4 = vsel %vm355_vm6, %v326_v7, 0.0  ;;  %v378_v52 = vsel %vm355_vm6, %v346_v11, 0.0 }
  0xc1   :  { %v383_v43 = vadd.f32 %v382_v9, %v367_v46  ;;  %v376_v56 = vadd.f32 %v375_v17, %v374_v4  ;;  %v377_v20 = vsel %vm355_vm6, %v342_v16, 0.0 }
  0xc2   :  { %v379_v28 = vadd.f32 %v378_v52, %v377_v20 }
  0xc3   :  { %v384_v48 = vadd.f32 %v383_v43, %v370_v15 }
  0xc5   :  { %v385_v19 = vadd.f32 %v384_v48, %v373_v47 }
  0xc7   :  { %v386_v60 = vadd.f32 %v385_v19, %v376_v56 }
  0xc9   :  { %v387_v5 = vadd.f32 %v386_v60, %v379_v28 }
  0xcb   :  { %v388_v53 = vsel %vm355_vm6, %v387_v5, 0.0 }
  0xcc   :  { %v389_v49 = vrot.slane %v388_v53, 4 }
  0xce   :  { %v390_v50 = vadd.f32 %v389_v49, %v388_v53 }
  0xd0   :  { %v391_v61 = vrot.slane %v390_v50, 2 }
  0xd2   :  { %v392_v59 = vadd.f32 %v391_v61, %v390_v50 }
  0xd4   :  { %v393_v31 = vrot.slane %v392_v59, 1 }
  0xd6   :  { %v394_v36 = vadd.f32 %v393_v31, %v392_v59 }
  0xd8   :  { %396 = vst [vmem:[#allocation7] sm:$0x1] %v394_v36 }
  0xd9   :  { %510 = shalt.err (!%p507_p6)
}
  0xda   :  { %s511_s19 = scalar_lea.hbm %s844_s3, 128 }
  0xdb   :  { %p512_p7 = scmp.ne.s32.totalorder %s844_s3, %s511_s19  ;;  %p515_p8 = scmp.lt.u32.totalorder %s511_s19, %s844_s3 }
  0xdd   :  { %p517_p9 = pnand %p515_p8, %p512_p7 }
  0xdf   :  { %520 = shalt.err (!%p517_p9)
}
  0xe0   :  { %406 = dma.vmem_to_hbm [thread:$0]  %s404_s2, 128, %s844_s3, [#allocation4]  }
  0xe1   :  { %525 = dma.done.wait [#allocation4], 128  }
  0xe2   :  { %526 = vsyncadd [#allocation4], 4294967168 }
  0xe3   :  { %410 = vsyncpa [#allocation3], 1 }
  0xe4   :  { %411 = vsyncpa [#allocation6], 1 }
  0xe5   :  { %412 = vsyncpa [#allocation4], 1 }

</bundles_post_ra>
